<compile_context>
chip_gen: v7x
topology: tpu7x:2x2x1
jax: 0.10.0
libtpu: 0.0.40
codegen_flags: <defaults>
</compile_context>

<pallas_src>
import jax
import jax.numpy as jnp
from jax.experimental import pallas as pl
from jax.experimental.pallas import tpu as pltpu


def _cdiv(a, b):
    return -(-a // b)


def _loss_stats_kernel(x_ref, t_ref, boost_ref,
                       inter_ref, card_ref, tsum_ref, bce_ref):
    """One (1, C, TP) tile of logits/targets -> accumulate per-class stats.

    Outputs (all (C, 1) f32, resident across the whole grid):
      inter_ref : sum_pixels sigmoid(x) * y_true1
      card_ref  : sum_pixels sigmoid(x) + y_true1
      tsum_ref  : sum_pixels y_true
      bce_ref   : per-class partial sum of stable BCE-with-logits terms
    """
    is_first = jnp.logical_and(pl.program_id(0) == 0, pl.program_id(1) == 0)

    @pl.when(is_first)
    def _init():
        inter_ref[...] = jnp.zeros_like(inter_ref)
        card_ref[...] = jnp.zeros_like(card_ref)
        tsum_ref[...] = jnp.zeros_like(tsum_ref)
        bce_ref[...] = jnp.zeros_like(bce_ref)

    x = x_ref[0].astype(jnp.float32)   # (C, TP) logits
    t = t_ref[0].astype(jnp.float32)   # (C, TP) targets
    boost = boost_ref[...]             # (C, 1) constant: 1.0 on classes {1,3,5,8}

    # One transcendental exp per element, shared by BCE and sigmoid.
    e = jnp.exp(-jnp.abs(x))                       # exp(-|x|)
    d = 1.0 + e
    r = pl.reciprocal(d, approx=True)              # fast EUP reciprocal
    r = r * (2.0 - d * r)                          # one Newton step -> ~f32 accuracy
    # sigmoid(x) = 1/(1+e) for x >= 0, e/(1+e) for x < 0
    p = jnp.where(x >= 0.0, 1.0, e) * r

    # Numerically stable BCE-with-logits: max(x,0) - x*t + log1p(exp(-|x|))
    bce_elem = jnp.maximum(x, 0.0) - x * t + jnp.log1p(e)

    # y_true1 = y_true * sum_classes(y_true) + boost * y_true
    tsum_pix = jnp.sum(t, axis=0, keepdims=True)   # (1, TP) sum over classes
    t1 = t * (tsum_pix + boost)                    # (C, TP)

    inter_ref[...] += jnp.sum(p * t1, axis=1, keepdims=True)      # (C, 1)
    card_ref[...] += jnp.sum(p + t1, axis=1, keepdims=True)       # (C, 1)
    tsum_ref[...] += jnp.sum(t, axis=1, keepdims=True)            # (C, 1)
    bce_ref[...] += jnp.sum(bce_elem, axis=1, keepdims=True)      # (C, 1)


def _pick_pixel_tile(hw, c, itemsize):
    """Choose a lane-axis tile size TP (multiple of 128) and block count.

    Target ~2 MiB per logits tile so that 2 inputs x 2 pipeline buffers stays
    well inside the scoped VMEM budget on every chip (incl. v7x 64 MiB/32 MiB).
    """
    target_bytes = 2 * 1024 * 1024
    target_elems = max(128, target_bytes // max(int(itemsize), 1))
    tp_target = max(128, (target_elems // max(c, 1)) // 128 * 128)
    nblocks = max(1, _cdiv(hw, tp_target))
    tp = _cdiv(_cdiv(hw, nblocks), 128) * 128      # minimal padding (< 128/block)
    return tp, nblocks


def _loss_stats(x3, t3, boost, tp, nblocks):
    N, C, HWp = x3.shape
    assert HWp == tp * nblocks
    grid = (N, nblocks)
    out_spec = pl.BlockSpec((C, 1), lambda n, p: (0, 0))
    return pl.pallas_call(
        _loss_stats_kernel,
        grid=grid,
        in_specs=[
            pl.BlockSpec((1, C, tp), lambda n, p: (n, 0, p)),   # logits tile
            pl.BlockSpec((1, C, tp), lambda n, p: (n, 0, p)),   # target tile
            pl.BlockSpec((C, 1), lambda n, p: (0, 0)),          # boost (resident)
        ],
        out_specs=(out_spec, out_spec, out_spec, out_spec),
        out_shape=(
            jax.ShapeDtypeStruct((C, 1), jnp.float32),
            jax.ShapeDtypeStruct((C, 1), jnp.float32),
            jax.ShapeDtypeStruct((C, 1), jnp.float32),
            jax.ShapeDtypeStruct((C, 1), jnp.float32),
        ),
        compiler_params=pltpu.CompilerParams(
            dimension_semantics=("arbitrary", "arbitrary"),
            vmem_limit_bytes=32 * 1024 * 1024,
        ),
    )(x3, t3, boost)


class ComposedLossWithLogits:
    """JAX/Pallas port of ComposedLossWithLogits (supported: bce, JaccardLoss)."""

    _SUPPORTED = ("bce", "JaccardLoss")

    def __init__(self, names_and_weights):
        assert type(names_and_weights) in (dict, list)
        if isinstance(names_and_weights, dict):
            names_and_weights = list(names_and_weights.items())
        self.names, weights = [], []
        for name, w in names_and_weights:
            if w == 0:
                continue
            # TODO(synk): 'dice'/'iou'/'lovasz'/'focal' implementations were not
            # provided in the source module; only 'bce' and 'JaccardLoss' here.
            assert name in self._SUPPORTED, f"unsupported loss {name}"
            self.names.append(name)
            weights.append(float(w))
        w = jnp.asarray(weights, jnp.float32)
        self.weights = w / jnp.sum(w)   # matches register_buffer + normalization

    def __call__(self, logit, target):
        N, C, H, W = logit.shape
        HW = H * W

        # Free views of NCHW (no transpose pass): pixels on the lane axis.
        x3 = logit.reshape(N, C, HW)
        t3 = target.reshape(N, C, HW)

        tp, nblocks = _pick_pixel_tile(HW, C, jnp.dtype(logit.dtype).itemsize)
        padded = tp * nblocks
        if padded != HW:
            pad = padded - HW
            # Pad logits with a very negative value and targets with 0 so padded
            # pixels contribute exactly 0 to every statistic.
            x3 = jnp.pad(x3, ((0, 0), (0, 0), (0, pad)), constant_values=-1e4)
            t3 = jnp.pad(t3, ((0, 0), (0, 0), (0, pad)), constant_values=0)

        # Constant per-class boost for y_true1 (classes 1, 3, 5, 8).
        cls = jnp.arange(C)
        boost = ((cls == 1) | (cls == 3) | (cls == 5) | (cls == 8))
        boost = boost.astype(jnp.float32).reshape(C, 1)

        inter, card, tsum, bce_part = _loss_stats(x3, t3, boost, tp, nblocks)
        inter = inter[:, 0]
        card = card[:, 0]
        tsum = tsum[:, 0]

        eps = 1e-7
        per_loss = {}
        # BCEWithLogitsLoss (mean over all real elements; padding contributed 0).
        per_loss["bce"] = jnp.sum(bce_part) / float(N * C * H * W)
        # JaccardLoss (smooth=0.0, eps=1e-7, classes=None, log_loss=False).
        union = card - inter
        score = inter / jnp.maximum(union, eps)
        jl = (1.0 - score) * (tsum > 0).astype(jnp.float32)
        per_loss["JaccardLoss"] = jnp.mean(jl)

        losses = jnp.stack([per_loss[n] for n in self.names])
        summed_loss = jnp.sum(losses * self.weights)
        return summed_loss, losses


def _reference(logit, target, weights):
    """Pure-JAX reference reproducing the PyTorch forward semantics."""
    x, t = logit.astype(jnp.float32), target.astype(jnp.float32)
    bce = jnp.mean(jnp.maximum(x, 0.0) - x * t + jnp.log1p(jnp.exp(-jnp.abs(x))))
    N, C = x.shape[0], x.shape[1]
    p = jax.nn.sigmoid(x).reshape(N, C, -1)
    tt = t.reshape(N, C, -1)
    idx = jnp.array([1, 3, 5, 8])
    t1 = tt * jnp.sum(tt, axis=1, keepdims=True)
    t1 = t1.at[:, idx, :].add(tt[:, idx, :])
    inter = jnp.sum(p * t1, axis=(0, 2))
    card = jnp.sum(p + t1, axis=(0, 2))
    score = inter / jnp.maximum(card - inter, 1e-7)
    jl = jnp.mean((1.0 - score) * (jnp.sum(tt, axis=(0, 2)) > 0).astype(jnp.float32))
    losses = jnp.stack([bce, jl])
    return jnp.sum(losses * weights), losses


if __name__ == "__main__":
    key = jax.random.PRNGKey(0)
    # JaccardLoss hard-codes boosted class channels 1, 3, 5, 8 -> need C >= 9.
    N, C, H, W = 2, 10, 16, 16
    k1, k2 = jax.random.split(key)
    logit = jax.random.normal(k1, (N, C, H, W), jnp.float32)
    target = (jax.random.uniform(k2, (N, C, H, W)) > 0.5).astype(jnp.float32)

    loss_fn = ComposedLossWithLogits([("bce", 1.0), ("JaccardLoss", 1.0)])
    summed, losses = loss_fn(logit, target)
    summed, losses = jax.block_until_ready((summed, losses))

    ref_summed, ref_losses = _reference(logit, target, loss_fn.weights)
    # 1e-4 tolerance accounts for the approx-reciprocal (+Newton) sigmoid path.
    assert jnp.allclose(losses, ref_losses, atol=1e-4, rtol=1e-4), (losses, ref_losses)
    assert jnp.allclose(summed, ref_summed, atol=1e-4, rtol=1e-4), (summed, ref_summed)

    print("KERNEL_OK")
</pallas_src>

<mosaic_0001>
module attributes {stable_mosaic.version = 11 : i64} {
  func.func @_loss_stats_kernel(%arg0: i32, %arg1: i32, %arg2: memref<1x10x256xf32, #tpu.memory_space<vmem>>, %arg3: memref<1x10x256xf32, #tpu.memory_space<vmem>>, %arg4: memref<10x1xf32, #tpu.memory_space<vmem>>, %arg5: memref<10x1xf32, #tpu.memory_space<vmem>>, %arg6: memref<10x1xf32, #tpu.memory_space<vmem>>, %arg7: memref<10x1xf32, #tpu.memory_space<vmem>>, %arg8: memref<10x1xf32, #tpu.memory_space<vmem>>) attributes {dimension_semantics = [#tpu.dimension_semantics<arbitrary>, #tpu.dimension_semantics<arbitrary>], iteration_bounds = array<i64: 2, 1>, scalar_prefetch = 0 : i64, scratch_operands = 0 : i64, tpu.core_type = #tpu.core_type<tc>, window_params = [{transform_indices = @transform_0, window_bounds = array<i64: 1, 10, 256>}, {transform_indices = @transform_1, window_bounds = array<i64: 1, 10, 256>}, {pipeline_mode = #tpu.pipeline_mode<synchronous>, transform_indices = @transform_2, window_bounds = array<i64: 10, 1>}, {pipeline_mode = #tpu.pipeline_mode<synchronous>, transform_indices = @transform_3, window_bounds = array<i64: 10, 1>}, {pipeline_mode = #tpu.pipeline_mode<synchronous>, transform_indices = @transform_4, window_bounds = array<i64: 10, 1>}, {pipeline_mode = #tpu.pipeline_mode<synchronous>, transform_indices = @transform_5, window_bounds = array<i64: 10, 1>}, {pipeline_mode = #tpu.pipeline_mode<synchronous>, transform_indices = @transform_6, window_bounds = array<i64: 10, 1>}]} {
    %c0_i32 = arith.constant 0 : i32
    %0 = arith.cmpi eq, %arg0, %c0_i32 : i32
    %c0_i32_0 = arith.constant 0 : i32
    %1 = arith.cmpi eq, %arg1, %c0_i32_0 : i32
    %2 = arith.andi %0, %1 : i1
    %3 = arith.extui %2 : i1 to i32
    %c0_i32_1 = arith.constant 0 : i32
    %4 = arith.cmpi ne, %3, %c0_i32_1 : i32
    scf.if %4 {
      %cst_35 = arith.constant 0.000000e+00 : f32
      %60 = vector.broadcast %cst_35 : f32 to vector<10x1xf32>
      %c0_36 = arith.constant 0 : index
      %c0_37 = arith.constant 0 : index
      %61 = vector.load %arg5[%c0_36, %c0_37] : memref<10x1xf32, #tpu.memory_space<vmem>>, vector<10x1xf32>
      tpu.vector_store %arg5[%c0_36, %c0_37], %60 {strides = array<i32>} : memref<10x1xf32, #tpu.memory_space<vmem>>, vector<10x1xf32>,
      %cst_38 = arith.constant 0.000000e+00 : f32
      %62 = vector.broadcast %cst_38 : f32 to vector<10x1xf32>
      %c0_39 = arith.constant 0 : index
      %c0_40 = arith.constant 0 : index
      %63 = vector.load %arg6[%c0_39, %c0_40] : memref<10x1xf32, #tpu.memory_space<vmem>>, vector<10x1xf32>
      tpu.vector_store %arg6[%c0_39, %c0_40], %62 {strides = array<i32>} : memref<10x1xf32, #tpu.memory_space<vmem>>, vector<10x1xf32>,
      %cst_41 = arith.constant 0.000000e+00 : f32
      %64 = vector.broadcast %cst_41 : f32 to vector<10x1xf32>
      %c0_42 = arith.constant 0 : index
      %c0_43 = arith.constant 0 : index
      %65 = vector.load %arg7[%c0_42, %c0_43] : memref<10x1xf32, #tpu.memory_space<vmem>>, vector<10x1xf32>
      tpu.vector_store %arg7[%c0_42, %c0_43], %64 {strides = array<i32>} : memref<10x1xf32, #tpu.memory_space<vmem>>, vector<10x1xf32>,
      %cst_44 = arith.constant 0.000000e+00 : f32
      %66 = vector.broadcast %cst_44 : f32 to vector<10x1xf32>
      %c0_45 = arith.constant 0 : index
      %c0_46 = arith.constant 0 : index
      %67 = vector.load %arg8[%c0_45, %c0_46] : memref<10x1xf32, #tpu.memory_space<vmem>>, vector<10x1xf32>
      tpu.vector_store %arg8[%c0_45, %c0_46], %66 {strides = array<i32>} : memref<10x1xf32, #tpu.memory_space<vmem>>, vector<10x1xf32>,
    } else {
    }
    %c0 = arith.constant 0 : index
    %c0_2 = arith.constant 0 : index
    %c0_3 = arith.constant 0 : index
    %5 = vector.load %arg2[%c0, %c0_2, %c0_3] : memref<1x10x256xf32, #tpu.memory_space<vmem>>, vector<1x10x256xf32>
    %6 = vector.shape_cast %5 : vector<1x10x256xf32> to vector<10x256xf32>
    %c0_4 = arith.constant 0 : index
    %c0_5 = arith.constant 0 : index
    %c0_6 = arith.constant 0 : index
    %7 = vector.load %arg3[%c0_4, %c0_5, %c0_6] : memref<1x10x256xf32, #tpu.memory_space<vmem>>, vector<1x10x256xf32>
    %8 = vector.shape_cast %7 : vector<1x10x256xf32> to vector<10x256xf32>
    %c0_7 = arith.constant 0 : index
    %c0_8 = arith.constant 0 : index
    %9 = vector.load %arg4[%c0_7, %c0_8] : memref<10x1xf32, #tpu.memory_space<vmem>>, vector<10x1xf32>
    %10 = math.absf %6 : vector<10x256xf32>
    %cst = arith.constant 0.000000e+00 : f32
    %11 = vector.broadcast %cst : f32 to vector<10x256xf32>
    %12 = arith.subf %11, %10 : vector<10x256xf32>
    %13 = math.exp %12 : vector<10x256xf32>
    %cst_9 = arith.constant 1.000000e+00 : f32
    %14 = vector.broadcast %cst_9 : f32 to vector<10x256xf32>
    %15 = arith.addf %14, %13 : vector<10x256xf32>
    %16 = tpu.reciprocal %15 {approx = true} : vector<10x256xf32> -> vector<10x256xf32>
    %17 = arith.mulf %15, %16 : vector<10x256xf32>
    %cst_10 = arith.constant 2.000000e+00 : f32
    %18 = vector.broadcast %cst_10 : f32 to vector<10x256xf32>
    %19 = arith.subf %18, %17 : vector<10x256xf32>
    %20 = arith.mulf %16, %19 : vector<10x256xf32>
    %cst_11 = arith.constant 0.000000e+00 : f32
    %21 = vector.broadcast %cst_11 : f32 to vector<10x256xf32>
    %22 = arith.cmpf oge, %6, %21 : vector<10x256xf32>
    %cst_12 = arith.constant 1.000000e+00 : f32
    %23 = vector.broadcast %cst_12 : f32 to vector<10x256xf32>
    %24 = arith.select %22, %23, %13 : vector<10x256xi1>, vector<10x256xf32>
    %25 = arith.mulf %24, %20 : vector<10x256xf32>
    %cst_13 = arith.constant 0.000000e+00 : f32
    %26 = vector.broadcast %cst_13 : f32 to vector<10x256xf32>
    %27 = arith.maximumf %6, %26 : vector<10x256xf32>
    %28 = arith.mulf %6, %8 : vector<10x256xf32>
    %29 = arith.subf %27, %28 : vector<10x256xf32>
    %30 = math.log1p %13 : vector<10x256xf32>
    %31 = arith.addf %29, %30 : vector<10x256xf32>
    %cst_14 = arith.constant dense<0.000000e+00> : vector<256xf32>
    %32 = vector.multi_reduction <add>, %8, %cst_14 [0] : vector<10x256xf32> to vector<256xf32>
    %33 = vector.shape_cast %32 : vector<256xf32> to vector<1x256xf32>
    %34 = vector.broadcast %33 : vector<1x256xf32> to vector<10x256xf32>
    %35 = vector.broadcast %9 : vector<10x1xf32> to vector<10x256xf32>
    %36 = arith.addf %34, %35 : vector<10x256xf32>
    %37 = arith.mulf %8, %36 : vector<10x256xf32>
    %c0_15 = arith.constant 0 : index
    %c0_16 = arith.constant 0 : index
    %38 = vector.load %arg5[%c0_15, %c0_16] : memref<10x1xf32, #tpu.memory_space<vmem>>, vector<10x1xf32>
    %39 = arith.mulf %25, %37 : vector<10x256xf32>
    %cst_17 = arith.constant dense<0.000000e+00> : vector<10xf32>
    %40 = vector.multi_reduction <add>, %39, %cst_17 [1] : vector<10x256xf32> to vector<10xf32>
    %41 = vector.shape_cast %40 : vector<10xf32> to vector<10x1xf32>
    %42 = arith.addf %38, %41 : vector<10x1xf32>
    %c0_18 = arith.constant 0 : index
    %c0_19 = arith.constant 0 : index
    %43 = vector.load %arg5[%c0_18, %c0_19] : memref<10x1xf32, #tpu.memory_space<vmem>>, vector<10x1xf32>
    tpu.vector_store %arg5[%c0_18, %c0_19], %42 {strides = array<i32>} : memref<10x1xf32, #tpu.memory_space<vmem>>, vector<10x1xf32>,
    %c0_20 = arith.constant 0 : index
    %c0_21 = arith.constant 0 : index
    %44 = vector.load %arg6[%c0_20, %c0_21] : memref<10x1xf32, #tpu.memory_space<vmem>>, vector<10x1xf32>
    %45 = arith.addf %25, %37 : vector<10x256xf32>
    %cst_22 = arith.constant dense<0.000000e+00> : vector<10xf32>
    %46 = vector.multi_reduction <add>, %45, %cst_22 [1] : vector<10x256xf32> to vector<10xf32>
    %47 = vector.shape_cast %46 : vector<10xf32> to vector<10x1xf32>
    %48 = arith.addf %44, %47 : vector<10x1xf32>
    %c0_23 = arith.constant 0 : index
    %c0_24 = arith.constant 0 : index
    %49 = vector.load %arg6[%c0_23, %c0_24] : memref<10x1xf32, #tpu.memory_space<vmem>>, vector<10x1xf32>
    tpu.vector_store %arg6[%c0_23, %c0_24], %48 {strides = array<i32>} : memref<10x1xf32, #tpu.memory_space<vmem>>, vector<10x1xf32>,
    %c0_25 = arith.constant 0 : index
    %c0_26 = arith.constant 0 : index
    %50 = vector.load %arg7[%c0_25, %c0_26] : memref<10x1xf32, #tpu.memory_space<vmem>>, vector<10x1xf32>
    %cst_27 = arith.constant dense<0.000000e+00> : vector<10xf32>
    %51 = vector.multi_reduction <add>, %8, %cst_27 [1] : vector<10x256xf32> to vector<10xf32>
    %52 = vector.shape_cast %51 : vector<10xf32> to vector<10x1xf32>
    %53 = arith.addf %50, %52 : vector<10x1xf32>
    %c0_28 = arith.constant 0 : index
    %c0_29 = arith.constant 0 : index
    %54 = vector.load %arg7[%c0_28, %c0_29] : memref<10x1xf32, #tpu.memory_space<vmem>>, vector<10x1xf32>
    tpu.vector_store %arg7[%c0_28, %c0_29], %53 {strides = array<i32>} : memref<10x1xf32, #tpu.memory_space<vmem>>, vector<10x1xf32>,
    %c0_30 = arith.constant 0 : index
    %c0_31 = arith.constant 0 : index
    %55 = vector.load %arg8[%c0_30, %c0_31] : memref<10x1xf32, #tpu.memory_space<vmem>>, vector<10x1xf32>
    %cst_32 = arith.constant dense<0.000000e+00> : vector<10xf32>
    %56 = vector.multi_reduction <add>, %31, %cst_32 [1] : vector<10x256xf32> to vector<10xf32>
    %57 = vector.shape_cast %56 : vector<10xf32> to vector<10x1xf32>
    %58 = arith.addf %55, %57 : vector<10x1xf32>
    %c0_33 = arith.constant 0 : index
    %c0_34 = arith.constant 0 : index
    %59 = vector.load %arg8[%c0_33, %c0_34] : memref<10x1xf32, #tpu.memory_space<vmem>>, vector<10x1xf32>
    tpu.vector_store %arg8[%c0_33, %c0_34], %58 {strides = array<i32>} : memref<10x1xf32, #tpu.memory_space<vmem>>, vector<10x1xf32>,
    return
  }
  func.func @transform_0(%arg0: i32, %arg1: i32) -> (i32, i32, i32) {
    %c0_i32 = arith.constant 0 : i32
    %c0_i32_0 = arith.constant 0 : i32
    return %arg0, %c0_i32, %arg1 : i32, i32, i32
  }
  func.func @transform_1(%arg0: i32, %arg1: i32) -> (i32, i32, i32) {
    %c0_i32 = arith.constant 0 : i32
    %c0_i32_0 = arith.constant 0 : i32
    return %arg0, %c0_i32, %arg1 : i32, i32, i32
  }
  func.func @transform_2(%arg0: i32, %arg1: i32) -> (i32, i32) {
    %c0_i32 = arith.constant 0 : i32
    %c0_i32_0 = arith.constant 0 : i32
    %c0_i32_1 = arith.constant 0 : i32
    return %c0_i32, %c0_i32_0 : i32, i32
  }
  func.func @transform_3(%arg0: i32, %arg1: i32) -> (i32, i32) {
    %c0_i32 = arith.constant 0 : i32
    %c0_i32_0 = arith.constant 0 : i32
    %c0_i32_1 = arith.constant 0 : i32
    return %c0_i32, %c0_i32_0 : i32, i32
  }
  func.func @transform_4(%arg0: i32, %arg1: i32) -> (i32, i32) {
    %c0_i32 = arith.constant 0 : i32
    %c0_i32_0 = arith.constant 0 : i32
    %c0_i32_1 = arith.constant 0 : i32
    return %c0_i32, %c0_i32_0 : i32, i32
  }
  func.func @transform_5(%arg0: i32, %arg1: i32) -> (i32, i32) {
    %c0_i32 = arith.constant 0 : i32
    %c0_i32_0 = arith.constant 0 : i32
    %c0_i32_1 = arith.constant 0 : i32
    return %c0_i32, %c0_i32_0 : i32, i32
  }
  func.func @transform_6(%arg0: i32, %arg1: i32) -> (i32, i32) {
    %c0_i32 = arith.constant 0 : i32
    %c0_i32_0 = arith.constant 0 : i32
    %c0_i32_1 = arith.constant 0 : i32
    return %c0_i32, %c0_i32_0 : i32, i32
  }
}

</mosaic_0001>

<bundles_post_ra>
// kernel: tpu_custom_call.1
= control target key start
LH: loop header
LB: loop body
LE: loop exit
PB: predicated region body
PF: predicated region fallthrough
CT: control target
= control target key end

     0   :  { %s722_s21 = smov 0   ;;  %s724_s22 = smov 0   ;;  %s956_s0 = inlined_call_operand.vmem [shape: f32[2,10,256], index: 0, kind: input, shape index: {}]   ;;  %s957_s1 = inlined_call_operand.vmem [shape: f32[2,10,256], index: 1, kind: input, shape index: {}]   ;;  %s958_s2 = inlined_call_operand.vmem [shape: f32[10,1], index: 2, kind: input, shape index: {}]   ;;  %s959_s3 = inlined_call_operand.vmem [shape: f32[10,1], index: 3, kind: output, shape index: {0}]   ;;  %s960_s4 = inlined_call_operand.vmem [shape: f32[10,1], index: 4, kind: output, shape index: {1}]   ;;  %s961_s5 = inlined_call_operand.vmem [shape: f32[10,1], index: 5, kind: output, shape index: {2}]   ;;  %s962_s6 = inlined_call_operand.vmem [shape: f32[10,1], index: 6, kind: output, shape index: {3}]  }
   0x1   :  { %s726_s23 = smov 0  }
   0x2 LB: > { %s29_s24 = sadd.s32 1, %s679_s22  ;;  %p599_p0 = scmp.ge.s32.totalorder %s683_s23, 1  ;;  %s683_s23 = sphi %s726_s23, %s17_s23   ;;  %s679_s22 = sphi %s724_s22, %s968_s22   ;;  %s675_s21 = sphi %s722_s21, %s967_s21  }
   0x3   : > { %p31_p1 = scmp.ge.s32.totalorder %s29_s24, 2  ;;  %p235_p2 = scmp.lt.s32.totalorder %s683_s23, 3 }
   0x5   : > { %s970_s24 = smov (%p31_p1, %s29_s24), 0  ;;  %p236_p3 = pnand %p599_p0, %p235_p2 }
   0x6   : > { %p274_p4 = scmp.lt.s32.totalorder (!%p236_p3), %s675_s21, 1  ;;  %p293_p5 = scmp.eq.s32.totalorder (!%p236_p3), %s675_s21, 0 }
   0x7   : > { %239 = sbr.rel (%p236_p3) target bundleno = 332 (0x14c), region = 32 }
   0xe   : > { %s972_s21 = smov (!%p274_p4, %s675_s21), 1  ;;  %298 = sbr.rel (!%p293_p5) target bundleno = 21 (0x15), region = 36 }
   0xf   : > { %s607_s25 = sshll.u32 %s972_s21, 5  ;;  %vm299_vm0 = vcmask (%p293_p5), 7168   ;;  %vm301_vm1 = vcmask (%p293_p5), 1024   ;;  %v685_v0 = vmov (%p293_p5), 0.0  }
  0x10   : > { %s281_s28 = scalar_lea.vmem %s956_s0, %s607_s25  ;;  %s746_s7 = scalar_lea.vmem %s957_s1, %s607_s25  ;;  %300 = vst.msk [vmem:[%s959_s3] sm:$0xff] (%p293_p5), %vm299_vm0, %v685_v0  ;;  %303 = vst.msk [vmem:[%s960_s4] sm:$0xff] (%p293_p5), %vm299_vm0, %v685_v0 }
  0x11   : > { %305 = vst.msk [vmem:[%s961_s5] sm:$0xff] (%p293_p5), %vm299_vm0, %v685_v0  ;;  %307 = vst.msk [vmem:[%s962_s6] sm:$0xff] (%p293_p5), %vm299_vm0, %v685_v0 }
  0x12   : > { %302 = vst.msk [vmem:[%s959_s3 + $0x8] sm:$0x3] (%p293_p5), %vm301_vm1, %v685_v0  ;;  %304 = vst.msk [vmem:[%s960_s4 + $0x8] sm:$0x3] (%p293_p5), %vm301_vm1, %v685_v0 }
  0x13   : > { %306 = vst.msk [vmem:[%s961_s5 + $0x8] sm:$0x3] (%p293_p5), %vm301_vm1, %v685_v0  ;;  %308 = vst.msk [vmem:[%s962_s6 + $0x8] sm:$0x3] (%p293_p5), %vm301_vm1, %v685_v0 }
  0x15 PF: > { %v318_v1 = vld [vmem:[%s958_s2 + $0x8] sm:$0x3]  ;;  %v686_v2 = vmov 0   ;;  %v317_v3 = vld [vmem:[%s958_s2] sm:$0xff]  ;;  %v784_v10 = vld [vmem:[%s281_s28 + $0x10] sm:$0x3] }
  0x16   : > { %636 = vset.pattern.permute.xlu0 %v686_v2  ;;  %v778_v4 = vld [vmem:[%s281_s28] sm:$0xff]  ;;  %v780_v5 = vld [vmem:[%s281_s28 + $0x8] sm:$0xff]  ;;  %v786_v12 = vld [vmem:[%s281_s28 + $0x18] sm:$0x3]  ;;  %v321_v14 = vand.u32 2147483647, %v784_v10 }
  0x17   : > { %443 = vperm.xlu0 %636, %v318_v1   ;;  %v319_v6 = vand.u32 2147483647, %v778_v4  ;;  %v320_v7 = vand.u32 2147483647, %v780_v5  ;;  %v322_v15 = vand.u32 2147483647, %v786_v12 }
  0x18   : > { %v325_v16 = vsub.f32 0.0, %v321_v14  ;;  %vm419_vm2 = vcmask 1041408   ;;  %v795_v22 = vld [vmem:[%s746_s7 + $0x10] sm:$0x3]  ;;  %v798_v23 = vld [vmem:[%s746_s7 + $0x18] sm:$0x3] }
  0x19   : > { %v323_v8 = vsub.f32 0.0, %v319_v6  ;;  %v324_v9 = vsub.f32 0.0, %v320_v7  ;;  %v326_v17 = vsub.f32 0.0, %v322_v15  ;;  %v802_v25 = vld [vmem:[%s746_s7] sm:$0xff]  ;;  %v805_v26 = vld [vmem:[%s746_s7 + $0x8] sm:$0xff]  ;;  %v809_v27 = vsel %vm419_vm2, %v795_v22, 0.0 }
  0x1a   : > { %v331_v18 = vmul.f32 1.442695, %v325_v16  ;;  %v813_v28 = vsel %vm419_vm2, %v798_v23, 0.0  ;;  %v421_v30 = vadd.f32 %v809_v27, %v802_v25  ;;  %vm355_vm3 = vcmp.ge.f32.partialorder %v778_v4, 0.0 }
  0x1b   : > { %438 = vperm.xlu0 %636, %v317_v3   ;;  %v327_v11 = vmul.f32 1.442695, %v323_v8  ;;  %v329_v13 = vmul.f32 1.442695, %v324_v9  ;;  %v333_v19 = vmul.f32 1.442695, %v326_v17  ;;  %v429_v31 = vadd.f32 %v813_v28, %v805_v26 }
  0x1c   : > { %v422_v33 = vrot.slane %v421_v30, 4  ;;  %vm356_vm4 = vcmp.ge.f32.partialorder %v780_v5, 0.0  ;;  %v833_v60 = vadd.f32 %v805_v26, %v802_v25  ;;  %vm357_vm5 = vcmp.ge.f32.partialorder %v784_v10, 0.0 }
  0x1d   : > { %637 = vpow2.f32 %v327_v11  ;;  %v430_v34 = vrot.slane %v429_v31, 4  ;;  %vm358_vm6 = vcmp.ge.f32.partialorder %v786_v12, 0.0  ;;  %v367_v0 = vmax.f32 %v778_v4, 0.0 }
  0x1e   : > { %639 = vpow2.f32 %v329_v13  ;;  %v423_v37 = vadd.f32 %v422_v33, %v421_v30  ;;  %v368_v15 = vmax.f32 %v780_v5, 0.0  ;;  %v372_v30 = vmul.f32 %v805_v26, %v780_v5 }
  0x1f   : > { %641 = vpow2.f32 %v331_v18  ;;  %v431_v38 = vadd.f32 %v430_v34, %v429_v31  ;;  %vm470_vm11 = vcmask 7168   ;;  %vm472_vm12 = vcmask 1024  }
  0x20   : > { %643 = vpow2.f32 %v333_v19  ;;  %v424_v42 = vrot.slane %v423_v37, 2 }
  0x21   : > { %v432_v43 = vrot.slane %v431_v38, 2 }
  0x22   : > { %v425_v46 = vadd.f32 %v424_v42, %v423_v37 }
  0x23   : > { %v433_v47 = vadd.f32 %v432_v43, %v431_v38 }
  0x24   : > { %v426_v50 = vrot.slane %v425_v46, 1 }
  0x25   : > { %v434_v51 = vrot.slane %v433_v47, 1 }
  0x26   : > { %v427_v62 = vadd.f32 %v426_v50, %v425_v46 }
  0x27   : > { %v790_v20 = vpop.eup %637  ;;  %v435_v63 = vadd.f32 %v434_v51, %v433_v47 }
  0x28   : > { %v792_v21 = vpop.eup %639  ;;  %v335_v24 = vadd.f32 1.0, %v790_v20  ;;  %v382_v54 = vmul.f32 -0.5, %v790_v20  ;;  %v359_v58 = vsel %vm355_vm3, 1.0, %v790_v20  ;;  %v385_v1 = vand.u32 2147483647, %v790_v20 }
  0x29   : > { %v336_v29 = vadd.f32 1.0, %v792_v21  ;;  %v820_v32 = vpop.eup %641  ;;  %v360_v59 = vsel %vm356_vm4, 1.0, %v792_v21  ;;  %v391_v61 = vmul.f32 -0.5, %v792_v21  ;;  %v394_v17 = vand.u32 2147483647, %v792_v21 }
  0x2a   : > { %645 = vrcp.f32 %v335_v24  ;;  %v822_v35 = vpop.eup %643  ;;  %v337_v36 = vadd.f32 1.0, %v820_v32  ;;  %v383_v3 = vadd.f32 1.0, %v382_v54  ;;  %vm849_vm7 = vcmp.lt.f32.partialorder %v385_v1, 0.0004427343 }
  0x2b   : > { %647 = vrcp.f32 %v336_v29  ;;  %v338_v39 = vadd.f32 1.0, %v822_v35  ;;  %v392_v16 = vadd.f32 1.0, %v391_v61  ;;  %vm854_vm8 = vcmp.lt.f32.partialorder %v394_v17, 0.0004427343 }
  0x2c   : > { %649 = vrcp.f32 %v337_v36  ;;  %v384_v31 = vmul.f32 %v790_v20, %v383_v3  ;;  %v362_v50 = vsel %vm358_vm6, 1.0, %v822_v35  ;;  %v373_v3 = vmul.f32 %v795_v22, %v784_v10 }
  0x2d   : > { %651 = vrcp.f32 %v338_v39  ;;  %v393_v43 = vmul.f32 %v792_v21, %v392_v16  ;;  %v361_v21 = vsel %vm357_vm5, 1.0, %v820_v32 }
  0x2e   : > { %653 = vlog2.f32 %v335_v24 }
  0x2f   : > { %655 = vlog2.f32 %v336_v29 }
  0x30   : > { %657 = vlog2.f32 %v337_v36 }
  0x31   : > { %659 = vlog2.f32 %v338_v39 }
  0x34   : > { %v646_v40 = vpop.eup %645 }
  0x35   : > { %v648_v41 = vpop.eup %647  ;;  %v343_v44 = vmul.f32 %v646_v40, %v335_v24 }
  0x36   : > { %v344_v45 = vmul.f32 %v648_v41, %v336_v29  ;;  %v650_v52 = vpop.eup %649  ;;  %v371_v29 = vmul.f32 %v802_v25, %v778_v4 }
  0x37   : > { %v347_v48 = vsub.f32 2.0, %v343_v44  ;;  %v652_v55 = vpop.eup %651  ;;  %v345_v6 = vmul.f32 %v650_v52, %v337_v36 }
  0x38   : > { %v348_v49 = vsub.f32 2.0, %v344_v45  ;;  %v346_v7 = vmul.f32 %v652_v55, %v338_v39  ;;  %v654_v14 = vpop.eup %653 }
  0x39   : > { %v351_v56 = vmul.f32 %v646_v40, %v347_v48  ;;  %v656_v18 = vpop.eup %655  ;;  %v349_v34 = vsub.f32 2.0, %v345_v6  ;;  %v375_v48 = vsub.f32 %v367_v0, %v371_v29  ;;  %v497_v0 = vadd.f32 %v813_v28, %v809_v27 }
  0x3a   : > { %v352_v57 = vmul.f32 %v648_v41, %v348_v49  ;;  %v350_v36 = vsub.f32 2.0, %v346_v7  ;;  %v381_v41 = vmul.f32 0.6931472, %v654_v14  ;;  %v390_v42 = vmul.f32 0.6931472, %v656_v18  ;;  %v658_v51 = vpop.eup %657 }
  0x3b   : > { %v363_v11 = vmul.f32 %v359_v58, %v351_v56  ;;  %v353_v46 = vmul.f32 %v650_v52, %v349_v34  ;;  %v376_v49 = vsub.f32 %v368_v15, %v372_v30  ;;  %v660_v58 = vpop.eup %659  ;;  %v374_v6 = vmul.f32 %v798_v23, %v786_v12 }
  0x3c   : > { %v364_v13 = vmul.f32 %v360_v59, %v352_v57  ;;  %v354_v47 = vmul.f32 %v652_v55, %v350_v36  ;;  %v387_v54 = vsel %vm849_vm7, %v384_v31, %v381_v41  ;;  %v396_v52 = vsel %vm854_vm8, %v393_v43, %v390_v42  ;;  %v474_v36 = vld [vmem:[%s960_s4] sm:$0xff] }
  0x3d   : > { %v403_v55 = vand.u32 2147483647, %v820_v32  ;;  %v412_v57 = vand.u32 2147483647, %v822_v35  ;;  %v415_v1 = vadd.f32 %v387_v54, %v375_v48  ;;  %v369_v7 = vmax.f32 %v784_v10, 0.0  ;;  %v492_v42 = vld [vmem:[%s961_s5] sm:$0xff] }
  0x3f   : > { %vm404_vm9 = vcmp.lt.f32.partialorder %v403_v55, 0.0004427343  ;;  %vm413_vm10 = vcmp.lt.f32.partialorder %v412_v57, 0.0004427343 }
  0x96   : > { %v444_v53 = vpop.permute.xlu0 %443 }
  0x97   : > { %v448_v44 = vadd.f32 %v444_v53, %v427_v62  ;;  %v449_v45 = vadd.f32 %v444_v53, %v435_v63 }
  0x99   : > { %v452_v59 = vmul.f32 %v448_v44, %v795_v22  ;;  %v453_v61 = vmul.f32 %v449_v45, %v798_v23  ;;  %v377_v22 = vsub.f32 %v369_v7, %v373_v3 }
  0x9a   : > { %v439_v2 = vpop.permute.xlu0 %438 }
  0x9b   : > { %v446_v8 = vadd.f32 %v439_v2, %v427_v62  ;;  %v447_v9 = vadd.f32 %v439_v2, %v435_v63  ;;  %v365_v62 = vmul.f32 %v361_v21, %v353_v46  ;;  %v366_v63 = vmul.f32 %v362_v50, %v354_v47  ;;  %v455_v46 = vld [vmem:[%s959_s3 + $0x8] sm:$0x3] }
  0x9c   : > { %v416_v2 = vadd.f32 %v396_v52, %v376_v49  ;;  %v475_v49 = vld [vmem:[%s960_s4 + $0x8] sm:$0x3] }
  0x9d   : > { %v450_v19 = vmul.f32 %v446_v8, %v802_v25  ;;  %v451_v24 = vmul.f32 %v447_v9, %v805_v26  ;;  %v400_v25 = vmul.f32 -0.5, %v820_v32  ;;  %v409_v26 = vmul.f32 -0.5, %v822_v35 }
  0x9e   : > { %v370_v8 = vmax.f32 %v786_v12, 0.0  ;;  %v399_v9 = vmul.f32 0.6931472, %v658_v51  ;;  %v458_v14 = vmul.f32 %v452_v59, %v365_v62  ;;  %v459_v27 = vmul.f32 %v453_v61, %v366_v63  ;;  %v505_v51 = vld [vmem:[%s962_s6 + $0x8] sm:$0x3] }
  0x9f   : > { %v476_v37 = vadd.f32 %v450_v19, %v363_v11  ;;  %v477_v38 = vadd.f32 %v451_v24, %v364_v13  ;;  %v456_v39 = vmul.f32 %v450_v19, %v363_v11  ;;  %v457_v40 = vmul.f32 %v451_v24, %v364_v13 }
  0xa0   : > { %v401_v53 = vadd.f32 1.0, %v400_v25  ;;  %v410_v56 = vadd.f32 1.0, %v409_v26  ;;  %v408_v13 = vmul.f32 0.6931472, %v660_v58  ;;  %v506_v28 = vadd.f32 %v416_v2, %v415_v1  ;;  %v504_v26 = vld [vmem:[%s962_s6] sm:$0xff] }
  0xa1   : > { %v480_v5 = vadd.f32 %v477_v38, %v476_v37  ;;  %v460_v20 = vadd.f32 %v457_v40, %v456_v39  ;;  %v378_v15 = vsub.f32 %v370_v8, %v374_v6  ;;  %v463_v10 = vsel %vm419_vm2, %v458_v14, 0.0  ;;  %v454_v37 = vld [vmem:[%s959_s3] sm:$0xff] }
  0xa2   : > { %v402_v11 = vmul.f32 %v820_v32, %v401_v53  ;;  %v464_v12 = vsel %vm419_vm2, %v459_v27, 0.0  ;;  %v478_v17 = vadd.f32 %v452_v59, %v365_v62  ;;  %v479_v18 = vadd.f32 %v453_v61, %v366_v63 }
  0xa3   : > { %481 = vadd.xlane.f32.xlu0 %v480_v5  ;;  %461 = vadd.xlane.f32.xlu1 %v460_v20  ;;  %v493_v5 = vld [vmem:[%s961_s5 + $0x8] sm:$0x3] }
  0xa4   : > { %v405_v16 = vsel %vm404_vm9, %v402_v11, %v399_v9  ;;  %v483_v24 = vsel %vm419_vm2, %v478_v17, 0.0  ;;  %v484_v29 = vsel %vm419_vm2, %v479_v18, 0.0 }
  0xa5   : > { %v417_v32 = vadd.f32 %v405_v16, %v377_v22  ;;  %v485_v33 = vadd.f32 %v484_v29, %v483_v24 }
  0xa7   : > { %495 = vadd.xlane.f32.xlu1 %v833_v60  ;;  %v411_v60 = vmul.f32 %v822_v35, %v410_v56  ;;  %v465_v35 = vadd.f32 %v464_v12, %v463_v10  ;;  %v509_v30 = vsel %vm419_vm2, %v417_v32, 0.0 }
  0xa9   : > { %v414_v23 = vsel %vm413_vm10, %v411_v60, %v408_v13 }
  0xaa   : > { %v418_v19 = vadd.f32 %v414_v23, %v378_v15 }
  0xab   : > { %498 = vadd.xlane.f32.xlu1 %v497_v0 }
  0xac   : > { %v510_v31 = vsel %vm419_vm2, %v418_v19, 0.0 }
  0xad   : > { %v511_v34 = vadd.f32 %v510_v31, %v509_v30 }
  0xaf   : > { %507 = vadd.xlane.f32.xlu1 %v506_v28 }
  0xb3   : > { %466 = vadd.xlane.f32.xlu1 %v465_v35 }
  0xb7   : > { %486 = vadd.xlane.f32.xlu1 %v485_v33 }
  0xbb   : > { %512 = vadd.xlane.f32.xlu1 %v511_v34 }
 0x130   : > { %v482_v38 = vpop.xlane.xlu0 %481  ;;  %v462_v39 = vpop.xlane.xlu1 %461 }
 0x131   : > { %v488_v40 = vadd.f32 %v482_v38, %v474_v36  ;;  %v468_v41 = vadd.f32 %v462_v39, %v454_v37 }
 0x133   : > { %490 = vst.msk [vmem:[%s960_s4] sm:$0xff] %vm470_vm11, %v488_v40  ;;  %471 = vst.msk [vmem:[%s959_s3] sm:$0xff] %vm470_vm11, %v468_v41 }
 0x134   : > { %v496_v43 = vpop.xlane.xlu1 %495 }
 0x135   : > { %v500_v4 = vadd.f32 %v496_v43, %v492_v42 }
 0x137   : > { %502 = vst.msk [vmem:[%s961_s5] sm:$0xff] %vm470_vm11, %v500_v4 }
 0x138   : > { %v499_v20 = vpop.xlane.xlu1 %498 }
 0x139   : > { %v501_v25 = vadd.f32 %v499_v20, %v493_v5 }
 0x13b   : > { %503 = vst.msk [vmem:[%s961_s5 + $0x8] sm:$0x3] %vm472_vm12, %v501_v25 }
 0x13c   : > { %v508_v44 = vpop.xlane.xlu1 %507 }
 0x13d   : > { %v514_v45 = vadd.f32 %v508_v44, %v504_v26 }
 0x13f   : > { %516 = vst.msk [vmem:[%s962_s6] sm:$0xff] %vm470_vm11, %v514_v45 }
 0x140   : > { %v467_v47 = vpop.xlane.xlu1 %466 }
 0x141   : > { %v469_v48 = vadd.f32 %v467_v47, %v455_v46 }
 0x143   : > { %473 = vst.msk [vmem:[%s959_s3 + $0x8] sm:$0x3] %vm472_vm12, %v469_v48 }
 0x144   : > { %v487_v21 = vpop.xlane.xlu1 %486 }
 0x145   : > { %v489_v50 = vadd.f32 %v487_v21, %v475_v49 }
 0x147   : > { %491 = vst.msk [vmem:[%s960_s4 + $0x8] sm:$0x3] %vm472_vm12, %v489_v50 }
 0x148   : > { %v513_v54 = vpop.xlane.xlu1 %512 }
 0x149   : > { %v515_v52 = vadd.f32 %v513_v54, %v505_v51 }
 0x14b   : > { %517 = vst.msk [vmem:[%s962_s6 + $0x8] sm:$0x3] %vm472_vm12, %v515_v52 }
 0x14c PF: > { %s17_s23 = sadd.s32 1, %s683_s23   ;;  %s967_s21 = smov %s679_s22 }
 0x14d   : > { %p14_p6 = scmp.ge.s32.totalorder %s17_s23, 4   ;;  %s968_s22 = smov %s970_s24 }
 0x14f   :  { %16 = sbr.rel (!%p14_p6) target bundleno = 2 (0x2), region = 89 }

</bundles_post_ra>
